<compile_context>
chip_gen: v7x
topology: tpu7x:2x2x1
jax: 0.10.0
libtpu: 0.0.40
codegen_flags: <defaults>
</compile_context>

<pallas_src>
import functools

import jax
import jax.numpy as jnp
from jax.experimental import pallas as pl
from jax.experimental.pallas import tpu as pltpu

LANE = 128   # last-dim padding granule (lane width)
SUBLANE = 8  # batch padding granule (sublane width)


def _round_up(x, m):
    return ((x + m - 1) // m) * m


# ----------------------------- Pallas kernel ------------------------------- #
def _value_mlp_kernel(num_layers, *refs):
    """Fused MLP.  refs = (x_ref, w0, b0, w1, b1, ..., w_{L-1}, b_{L-1}, o_ref).

    h = x; for each layer: h = h @ W + b; ReLU on all layers except the last
    (the value head).  Everything stays on-chip; one lane-dense store at the end.
    """
    x_ref = refs[0]
    o_ref = refs[-1]
    h = x_ref[...]
    for li in range(num_layers):
        w_ref = refs[1 + 2 * li]
        b_ref = refs[2 + 2 * li]
        h = jnp.dot(h, w_ref[...], preferred_element_type=jnp.float32) + b_ref[...]
        if li < num_layers - 1:
            h = jnp.maximum(h, 0.0)
    o_ref[...] = h.astype(o_ref.dtype)


# ------------------------------ JAX wrapper -------------------------------- #
def value_mlp_forward(s, params):
    """s: (B, repr_dim) f32.  params: list of (W, b) with W in PyTorch (out, in)
    layout, ReLU applied after every layer except the last.  Returns (B, out)."""
    num_layers = len(params)
    B, k0 = s.shape

    dims = [k0] + [w.shape[0] for (w, _) in params]
    dims_p = [_round_up(d, LANE) for d in dims]

    # Batch tile: pad to 8 sublanes only; single grid step at small batch.
    tb = min(_round_up(B, SUBLANE), 256)
    b_pad = _round_up(_round_up(B, SUBLANE), tb)

    x_p = jnp.zeros((b_pad, dims_p[0]), jnp.float32).at[:B, :k0].set(s)

    operands = [x_p]
    in_specs = [pl.BlockSpec((tb, dims_p[0]), lambda i: (i, 0))]
    for li, (w, b) in enumerate(params):
        kin, kout = dims[li], dims[li + 1]
        kin_p, kout_p = dims_p[li], dims_p[li + 1]
        # PyTorch (out, in) -> GEMM (in, out), zero-padded to lane multiples.
        w_p = jnp.zeros((kin_p, kout_p), jnp.float32).at[:kin, :kout].set(w.T)
        b_p = jnp.zeros((1, kout_p), jnp.float32).at[0, :kout].set(b)
        operands += [w_p, b_p]
        in_specs += [
            pl.BlockSpec((kin_p, kout_p), lambda i: (0, 0)),  # full weight matrix
            pl.BlockSpec((1, kout_p), lambda i: (0, 0)),      # bias row
        ]

    # VMEM budget: activation tile + output tile (double-buffered) + all
    # weights/biases (single-buffered, constant index map) + headroom.
    act_bytes = 2 * 4 * tb * (dims_p[0] + dims_p[-1])
    wgt_bytes = sum(4 * (dims_p[i] * dims_p[i + 1] + dims_p[i + 1])
                    for i in range(num_layers))
    vmem_bytes = min(int(1.5 * (2 * act_bytes + 2 * wgt_bytes)) + (4 << 20),
                     128 << 20)

    out = pl.pallas_call(
        functools.partial(_value_mlp_kernel, num_layers),
        out_shape=jax.ShapeDtypeStruct((b_pad, dims_p[-1]), jnp.float32),
        grid_spec=pltpu.PrefetchScalarGridSpec(
            num_scalar_prefetch=0,
            grid=(b_pad // tb,),
            in_specs=in_specs,
            out_specs=pl.BlockSpec((tb, dims_p[-1]), lambda i: (i, 0)),
        ),
        compiler_params=pltpu.CompilerParams(
            dimension_semantics=("parallel",),
            vmem_limit_bytes=vmem_bytes),
    )(*operands)

    return out[:B, :dims[-1]]


# ------------------------------ param init --------------------------------- #
def _orthogonal(key, out_dim, in_dim, gain=1.0):
    """Orthogonal init matching nn.init.orthogonal_ semantics (up to RNG)."""
    big, small = max(out_dim, in_dim), min(out_dim, in_dim)
    a = jax.random.normal(key, (big, small), jnp.float32)
    q, r = jnp.linalg.qr(a)
    q = q * jnp.sign(jnp.diagonal(r))
    if out_dim < in_dim:
        q = q.T
    return gain * q[:out_dim, :in_dim]


def init_value_mlp_params(key, repr_dim, feature_dim, hidden_dim, depth,
                          use_trunk=True):
    """Mirrors ValueMLP.__init__: optional trunk Linear(repr, feature)+ReLU,
    then MLP(input, hidden, depth, 1) = depth x (Linear+ReLU) + Linear(hidden,1).
    Orthogonal weights, zero biases (orthogonal_init)."""
    layer_dims = []
    d = repr_dim
    if use_trunk:
        layer_dims.append((feature_dim, d)); d = feature_dim
    layer_dims.append((hidden_dim, d)); d = hidden_dim
    for _ in range(depth - 1):
        layer_dims.append((hidden_dim, d))
    layer_dims.append((1, d))                       # value head, no activation

    params = []
    for (out_d, in_d) in layer_dims:
        key, kw = jax.random.split(key)
        w = _orthogonal(kw, out_d, in_d)
        b = jnp.zeros((out_d,), jnp.float32)
        params.append((w, b))
    return params


# --------------------------------- main ------------------------------------ #
if __name__ == "__main__":
    key = jax.random.PRNGKey(0)
    k_s, k_p = jax.random.split(key)

    # Small, deliberately non-lane-aligned cfg to exercise the padding path:
    # repr_dim=200, feature_dim=50, hidden_dim=32, depth=2, value head -> 1.
    batch, repr_dim, feature_dim, hidden_dim, depth = 2, 200, 50, 32, 2

    s = jax.random.normal(k_s, (batch, repr_dim), jnp.float32)
    params = init_value_mlp_params(k_p, repr_dim, feature_dim, hidden_dim,
                                   depth, use_trunk=True)

    fwd = jax.jit(value_mlp_forward)
    v = jax.block_until_ready(fwd(s, params))

    assert v.shape == (batch, 1), v.shape
    assert v.dtype == jnp.float32

    # Pure-JAX reference (high precision) to confirm fused-kernel semantics.
    h = s
    for li, (w, b) in enumerate(params):
        h = jnp.dot(h, w.T, precision=jax.lax.Precision.HIGHEST) + b
        if li < len(params) - 1:
            h = jnp.maximum(h, 0.0)
    assert jnp.allclose(v, h, atol=2e-2, rtol=2e-2), float(jnp.max(jnp.abs(v - h)))

    print("KERNEL_OK")
</pallas_src>

<mosaic_0001>
module attributes {stable_mosaic.version = 11 : i64} {
  func.func @_value_mlp_kernel(%arg0: i32, %arg1: memref<8x256xf32, #tpu.memory_space<vmem>>, %arg2: memref<256x128xf32, #tpu.memory_space<vmem>>, %arg3: memref<1x128xf32, #tpu.memory_space<vmem>>, %arg4: memref<128x128xf32, #tpu.memory_space<vmem>>, %arg5: memref<1x128xf32, #tpu.memory_space<vmem>>, %arg6: memref<128x128xf32, #tpu.memory_space<vmem>>, %arg7: memref<1x128xf32, #tpu.memory_space<vmem>>, %arg8: memref<128x128xf32, #tpu.memory_space<vmem>>, %arg9: memref<1x128xf32, #tpu.memory_space<vmem>>, %arg10: memref<8x128xf32, #tpu.memory_space<vmem>>) attributes {dimension_semantics = [#tpu.dimension_semantics<parallel>], iteration_bounds = array<i64: 1>, scalar_prefetch = 0 : i64, scratch_operands = 0 : i64, tpu.core_type = #tpu.core_type<tc>, window_params = [{transform_indices = @transform_0, window_bounds = array<i64: 8, 256>}, {pipeline_mode = #tpu.pipeline_mode<synchronous>, transform_indices = @transform_1, window_bounds = array<i64: 256, 128>}, {pipeline_mode = #tpu.pipeline_mode<synchronous>, transform_indices = @transform_2, window_bounds = array<i64: 1, 128>}, {pipeline_mode = #tpu.pipeline_mode<synchronous>, transform_indices = @transform_3, window_bounds = array<i64: 128, 128>}, {pipeline_mode = #tpu.pipeline_mode<synchronous>, transform_indices = @transform_4, window_bounds = array<i64: 1, 128>}, {pipeline_mode = #tpu.pipeline_mode<synchronous>, transform_indices = @transform_5, window_bounds = array<i64: 128, 128>}, {pipeline_mode = #tpu.pipeline_mode<synchronous>, transform_indices = @transform_6, window_bounds = array<i64: 1, 128>}, {pipeline_mode = #tpu.pipeline_mode<synchronous>, transform_indices = @transform_7, window_bounds = array<i64: 128, 128>}, {pipeline_mode = #tpu.pipeline_mode<synchronous>, transform_indices = @transform_8, window_bounds = array<i64: 1, 128>}, {transform_indices = @transform_9, window_bounds = array<i64: 8, 128>}]} {
    %c0 = arith.constant 0 : index
    %c0_0 = arith.constant 0 : index
    %0 = vector.load %arg1[%c0, %c0_0] : memref<8x256xf32, #tpu.memory_space<vmem>>, vector<8x256xf32>
    %c0_1 = arith.constant 0 : index
    %c0_2 = arith.constant 0 : index
    %1 = vector.load %arg2[%c0_1, %c0_2] : memref<256x128xf32, #tpu.memory_space<vmem>>, vector<256x128xf32>
    %cst = arith.constant dense<0.000000e+00> : vector<8x128xf32>
    %2 = tpu.matmul %0, %1, %cst {dimension_numbers = #tpu.dot_dimension_numbers<[1], [0], [0], [1], [0, 0, 1, 1], [], []>} : vector<8x256xf32>, vector<256x128xf32>, vector<8x128xf32> -> vector<8x128xf32>
    %c0_3 = arith.constant 0 : index
    %c0_4 = arith.constant 0 : index
    %3 = vector.load %arg3[%c0_3, %c0_4] : memref<1x128xf32, #tpu.memory_space<vmem>>, vector<1x128xf32>
    %4 = vector.broadcast %3 : vector<1x128xf32> to vector<8x128xf32>
    %5 = arith.addf %2, %4 : vector<8x128xf32>
    %cst_5 = arith.constant 0.000000e+00 : f32
    %6 = vector.broadcast %cst_5 : f32 to vector<8x128xf32>
    %7 = arith.maximumf %5, %6 : vector<8x128xf32>
    %c0_6 = arith.constant 0 : index
    %c0_7 = arith.constant 0 : index
    %8 = vector.load %arg4[%c0_6, %c0_7] : memref<128x128xf32, #tpu.memory_space<vmem>>, vector<128x128xf32>
    %cst_8 = arith.constant dense<0.000000e+00> : vector<8x128xf32>
    %9 = tpu.matmul %7, %8, %cst_8 {dimension_numbers = #tpu.dot_dimension_numbers<[1], [0], [0], [1], [0, 0, 1, 1], [], []>} : vector<8x128xf32>, vector<128x128xf32>, vector<8x128xf32> -> vector<8x128xf32>
    %c0_9 = arith.constant 0 : index
    %c0_10 = arith.constant 0 : index
    %10 = vector.load %arg5[%c0_9, %c0_10] : memref<1x128xf32, #tpu.memory_space<vmem>>, vector<1x128xf32>
    %11 = vector.broadcast %10 : vector<1x128xf32> to vector<8x128xf32>
    %12 = arith.addf %9, %11 : vector<8x128xf32>
    %cst_11 = arith.constant 0.000000e+00 : f32
    %13 = vector.broadcast %cst_11 : f32 to vector<8x128xf32>
    %14 = arith.maximumf %12, %13 : vector<8x128xf32>
    %c0_12 = arith.constant 0 : index
    %c0_13 = arith.constant 0 : index
    %15 = vector.load %arg6[%c0_12, %c0_13] : memref<128x128xf32, #tpu.memory_space<vmem>>, vector<128x128xf32>
    %cst_14 = arith.constant dense<0.000000e+00> : vector<8x128xf32>
    %16 = tpu.matmul %14, %15, %cst_14 {dimension_numbers = #tpu.dot_dimension_numbers<[1], [0], [0], [1], [0, 0, 1, 1], [], []>} : vector<8x128xf32>, vector<128x128xf32>, vector<8x128xf32> -> vector<8x128xf32>
    %c0_15 = arith.constant 0 : index
    %c0_16 = arith.constant 0 : index
    %17 = vector.load %arg7[%c0_15, %c0_16] : memref<1x128xf32, #tpu.memory_space<vmem>>, vector<1x128xf32>
    %18 = vector.broadcast %17 : vector<1x128xf32> to vector<8x128xf32>
    %19 = arith.addf %16, %18 : vector<8x128xf32>
    %cst_17 = arith.constant 0.000000e+00 : f32
    %20 = vector.broadcast %cst_17 : f32 to vector<8x128xf32>
    %21 = arith.maximumf %19, %20 : vector<8x128xf32>
    %c0_18 = arith.constant 0 : index
    %c0_19 = arith.constant 0 : index
    %22 = vector.load %arg8[%c0_18, %c0_19] : memref<128x128xf32, #tpu.memory_space<vmem>>, vector<128x128xf32>
    %cst_20 = arith.constant dense<0.000000e+00> : vector<8x128xf32>
    %23 = tpu.matmul %21, %22, %cst_20 {dimension_numbers = #tpu.dot_dimension_numbers<[1], [0], [0], [1], [0, 0, 1, 1], [], []>} : vector<8x128xf32>, vector<128x128xf32>, vector<8x128xf32> -> vector<8x128xf32>
    %c0_21 = arith.constant 0 : index
    %c0_22 = arith.constant 0 : index
    %24 = vector.load %arg9[%c0_21, %c0_22] : memref<1x128xf32, #tpu.memory_space<vmem>>, vector<1x128xf32>
    %25 = vector.broadcast %24 : vector<1x128xf32> to vector<8x128xf32>
    %26 = arith.addf %23, %25 : vector<8x128xf32>
    %c0_23 = arith.constant 0 : index
    %c0_24 = arith.constant 0 : index
    %27 = vector.load %arg10[%c0_23, %c0_24] : memref<8x128xf32, #tpu.memory_space<vmem>>, vector<8x128xf32>
    tpu.vector_store %arg10[%c0_23, %c0_24], %26 {strides = array<i32>} : memref<8x128xf32, #tpu.memory_space<vmem>>, vector<8x128xf32>,
    return
  }
  func.func @transform_0(%arg0: i32) -> (i32, i32) {
    %c0_i32 = arith.constant 0 : i32
    %c0_i32_0 = arith.constant 0 : i32
    return %arg0, %c0_i32 : i32, i32
  }
  func.func @transform_1(%arg0: i32) -> (i32, i32) {
    %c0_i32 = arith.constant 0 : i32
    %c0_i32_0 = arith.constant 0 : i32
    %c0_i32_1 = arith.constant 0 : i32
    return %c0_i32, %c0_i32_0 : i32, i32
  }
  func.func @transform_2(%arg0: i32) -> (i32, i32) {
    %c0_i32 = arith.constant 0 : i32
    %c0_i32_0 = arith.constant 0 : i32
    %c0_i32_1 = arith.constant 0 : i32
    return %c0_i32, %c0_i32_0 : i32, i32
  }
  func.func @transform_3(%arg0: i32) -> (i32, i32) {
    %c0_i32 = arith.constant 0 : i32
    %c0_i32_0 = arith.constant 0 : i32
    %c0_i32_1 = arith.constant 0 : i32
    return %c0_i32, %c0_i32_0 : i32, i32
  }
  func.func @transform_4(%arg0: i32) -> (i32, i32) {
    %c0_i32 = arith.constant 0 : i32
    %c0_i32_0 = arith.constant 0 : i32
    %c0_i32_1 = arith.constant 0 : i32
    return %c0_i32, %c0_i32_0 : i32, i32
  }
  func.func @transform_5(%arg0: i32) -> (i32, i32) {
    %c0_i32 = arith.constant 0 : i32
    %c0_i32_0 = arith.constant 0 : i32
    %c0_i32_1 = arith.constant 0 : i32
    return %c0_i32, %c0_i32_0 : i32, i32
  }
  func.func @transform_6(%arg0: i32) -> (i32, i32) {
    %c0_i32 = arith.constant 0 : i32
    %c0_i32_0 = arith.constant 0 : i32
    %c0_i32_1 = arith.constant 0 : i32
    return %c0_i32, %c0_i32_0 : i32, i32
  }
  func.func @transform_7(%arg0: i32) -> (i32, i32) {
    %c0_i32 = arith.constant 0 : i32
    %c0_i32_0 = arith.constant 0 : i32
    %c0_i32_1 = arith.constant 0 : i32
    return %c0_i32, %c0_i32_0 : i32, i32
  }
  func.func @transform_8(%arg0: i32) -> (i32, i32) {
    %c0_i32 = arith.constant 0 : i32
    %c0_i32_0 = arith.constant 0 : i32
    %c0_i32_1 = arith.constant 0 : i32
    return %c0_i32, %c0_i32_0 : i32, i32
  }
  func.func @transform_9(%arg0: i32) -> (i32, i32) {
    %c0_i32 = arith.constant 0 : i32
    %c0_i32_0 = arith.constant 0 : i32
    return %arg0, %c0_i32 : i32, i32
  }
}

</mosaic_0001>

<bundles_post_ra>
// kernel: value_mlp_forward.1
= control target key start
LH: loop header
LB: loop body
LE: loop exit
PB: predicated region body
PF: predicated region fallthrough
CT: control target
= control target key end

     0   :  { %v732_v3 = vmov 0.0|0.0   ;;  %vm733_vm0 = vmmov 0   ;;  %s1073_s1 = inlined_call_operand.vmem [shape: f32[256,128], index: 1, kind: input, shape index: {}]   ;;  %s1074_s0 = inlined_call_operand.vmem [shape: f32[8,256], index: 0, kind: input, shape index: {}]   ;;  %s1075_s3 = inlined_call_operand.vmem [shape: f32[128,128], index: 3, kind: input, shape index: {}]   ;;  %s1076_s5 = inlined_call_operand.vmem [shape: f32[128,128], index: 5, kind: input, shape index: {}]   ;;  %s1077_s2 = inlined_call_operand.vmem [shape: f32[1,128], index: 2, kind: input, shape index: {}]   ;;  %s1078_s7 = inlined_call_operand.vmem [shape: f32[128,128], index: 7, kind: input, shape index: {}]   ;;  %s1079_s4 = inlined_call_operand.vmem [shape: f32[1,128], index: 4, kind: input, shape index: {}]   ;;  %s1080_s6 = inlined_call_operand.vmem [shape: f32[1,128], index: 6, kind: input, shape index: {}]   ;;  %s1081_s8 = inlined_call_operand.vmem [shape: f32[1,128], index: 8, kind: input, shape index: {}]   ;;  %s1082_s9 = inlined_call_operand.vmem [shape: f32[8,128], index: 9, kind: output, shape index: {}]  }
   0x1   :  { %v50_v0 = vld [vmem:[%s1073_s1 + $0x80] sm:$0xff]  ;;  %v51_v1 = vld [vmem:[%s1073_s1 + $0x88] sm:$0xff]  ;;  %657 = vmatprep.subr.bf16.mxu1 %v732_v3  ;;  %v52_v6 = vld [vmem:[%s1073_s1 + $0x90] sm:$0xff] }
   0x2   :  { %v34_v2 = vld [vmem:[%s1073_s1] sm:$0xff]  ;;  %v625_v4 = vpack.c.bf16 %v51_v1, %v50_v0  ;;  %v35_v5 = vld [vmem:[%s1073_s1 + $0x8] sm:$0xff]  ;;  %v53_v7 = vld [vmem:[%s1073_s1 + $0x98] sm:$0xff] }
   0x3   :  { %v627_v8 = vpack.c.bf16 %v35_v5, %v34_v2  ;;  %v629_v9 = vpack.c.bf16 %v53_v7, %v52_v6  ;;  %v36_v10 = vld [vmem:[%s1073_s1 + $0x10] sm:$0xff]  ;;  %v37_v11 = vld [vmem:[%s1073_s1 + $0x18] sm:$0xff]  ;;  %v54_v12 = vld [vmem:[%s1073_s1 + $0xa0] sm:$0xff] }
   0x4   :  { %626 = vmatprep.subr.bf16.mxu0 %v625_v4  ;;  %v55_v13 = vld [vmem:[%s1073_s1 + $0xa8] sm:$0xff]  ;;  %v631_v14 = vpack.c.bf16 %v37_v11, %v36_v10  ;;  %v38_v16 = vld [vmem:[%s1073_s1 + $0x20] sm:$0xff]  ;;  %v56_v18 = vld [vmem:[%s1073_s1 + $0xb0] sm:$0xff] }
   0x5   :  { %628 = vmatpush3.bf16.msra.mxu0 %v627_v8  ;;  %v633_v15 = vpack.c.bf16 %v55_v13, %v54_v12  ;;  %v39_v17 = vld [vmem:[%s1073_s1 + $0x28] sm:$0xff]  ;;  %v57_v19 = vld [vmem:[%s1073_s1 + $0xb8] sm:$0xff]  ;;  %v40_v22 = vld [vmem:[%s1073_s1 + $0x30] sm:$0xff]  ;;  %v734_v12 = vmov 0.0  }
   0x6   :  { %630 = vmatprep.subr.bf16.mxu0 %v629_v9  ;;  %v635_v20 = vpack.c.bf16 %v39_v17, %v38_v16  ;;  %v637_v21 = vpack.c.bf16 %v57_v19, %v56_v18  ;;  %v41_v23 = vld [vmem:[%s1073_s1 + $0x38] sm:$0xff]  ;;  %v58_v24 = vld [vmem:[%s1073_s1 + $0xc0] sm:$0xff]  ;;  %v59_v25 = vld [vmem:[%s1073_s1 + $0xc8] sm:$0xff]  ;;  %552 = vmatprep.mubr.msk.f32.mxu1 %vm733_vm0, %v734_v12 }
   0x7   :  { %v33_v26 = vld [vmem:[%s1074_s0 + $0x8] sm:$0xff]  ;;  %v144_v27 = vld [vmem:[%s1075_s3] sm:$0xff]  ;;  %v639_v29 = vpack.c.bf16 %v41_v23, %v40_v22  ;;  %v146_v31 = vld [vmem:[%s1075_s3 + $0x10] sm:$0xff]  ;;  %v641_v33 = vpack.c.bf16 %v59_v25, %v58_v24 }
   0x8   :  { %137 = vmatprep.mubr.f32.mxu0 %v33_v26  ;;  %v145_v28 = vld [vmem:[%s1075_s3 + $0x8] sm:$0xff]  ;;  %v147_v32 = vld [vmem:[%s1075_s3 + $0x18] sm:$0xff]  ;;  %v42_v34 = vld [vmem:[%s1073_s1 + $0x40] sm:$0xff] }
   0x9   :  { %632 = vmatpush3.bf16.msra.mxu0 %v631_v14  ;;  %v658_v30 = vpack.c.bf16 %v145_v28, %v144_v27  ;;  %v43_v35 = vld [vmem:[%s1073_s1 + $0x48] sm:$0xff]  ;;  %v60_v36 = vld [vmem:[%s1073_s1 + $0xd0] sm:$0xff]  ;;  %v61_v37 = vld [vmem:[%s1073_s1 + $0xd8] sm:$0xff]  ;;  %v661_v38 = vpack.c.bf16 %v147_v32, %v146_v31 }
   0xa   :  { %634 = vmatprep.subr.bf16.mxu0 %v633_v15  ;;  %v148_v39 = vld [vmem:[%s1075_s3 + $0x20] sm:$0xff]  ;;  %v149_v40 = vld [vmem:[%s1075_s3 + $0x28] sm:$0xff]  ;;  %v643_v41 = vpack.c.bf16 %v43_v35, %v42_v34  ;;  %v645_v42 = vpack.c.bf16 %v61_v37, %v60_v36  ;;  %v44_v43 = vld [vmem:[%s1073_s1 + $0x50] sm:$0xff] }
   0xb   :  { %659 = vmatpush3.bf16.msra.mxu1 %v658_v30  ;;  %v45_v44 = vld [vmem:[%s1073_s1 + $0x58] sm:$0xff]  ;;  %v62_v45 = vld [vmem:[%s1073_s1 + $0xe0] sm:$0xff]  ;;  %v63_v46 = vld [vmem:[%s1073_s1 + $0xe8] sm:$0xff]  ;;  %v664_v47 = vpack.c.bf16 %v149_v40, %v148_v39 }
   0xc   :  { %660 = vmatprep.subr.bf16.mxu1 %v732_v3  ;;  %v150_v48 = vld [vmem:[%s1075_s3 + $0x30] sm:$0xff]  ;;  %v151_v49 = vld [vmem:[%s1075_s3 + $0x38] sm:$0xff]  ;;  %v647_v50 = vpack.c.bf16 %v45_v44, %v44_v43  ;;  %v649_v51 = vpack.c.bf16 %v63_v46, %v62_v45  ;;  %v46_v52 = vld [vmem:[%s1073_s1 + $0x60] sm:$0xff] }
   0xd   :  { %636 = vmatpush3.bf16.msra.mxu0 %v635_v20  ;;  %v47_v53 = vld [vmem:[%s1073_s1 + $0x68] sm:$0xff]  ;;  %v64_v54 = vld [vmem:[%s1073_s1 + $0xf0] sm:$0xff]  ;;  %v65_v55 = vld [vmem:[%s1073_s1 + $0xf8] sm:$0xff]  ;;  %v667_v56 = vpack.c.bf16 %v151_v49, %v150_v48 }
   0xe   :  { %638 = vmatprep.subr.bf16.mxu0 %v637_v21  ;;  %v152_v57 = vld [vmem:[%s1075_s3 + $0x40] sm:$0xff]  ;;  %v153_v58 = vld [vmem:[%s1075_s3 + $0x48] sm:$0xff]  ;;  %v651_v59 = vpack.c.bf16 %v47_v53, %v46_v52  ;;  %v653_v60 = vpack.c.bf16 %v65_v55, %v64_v54  ;;  %v48_v61 = vld [vmem:[%s1073_s1 + $0x70] sm:$0xff] }
   0xf   :  { %662 = vmatpush3.bf16.msra.mxu1 %v661_v38  ;;  %v49_v62 = vld [vmem:[%s1073_s1 + $0x78] sm:$0xff]  ;;  %v670_v63 = vpack.c.bf16 %v153_v58, %v152_v57  ;;  %v154_v0 = vld [vmem:[%s1075_s3 + $0x50] sm:$0xff]  ;;  %v32_v5 = vld [vmem:[%s1074_s0] sm:$0xff] }
  0x10   :  { %663 = vmatprep.subr.bf16.mxu1 %v732_v3  ;;  %v155_v1 = vld [vmem:[%s1075_s3 + $0x58] sm:$0xff]  ;;  %v655_v2 = vpack.c.bf16 %v49_v62, %v48_v61  ;;  %v156_v6 = vld [vmem:[%s1075_s3 + $0x60] sm:$0xff]  ;;  %v157_v7 = vld [vmem:[%s1075_s3 + $0x68] sm:$0xff] }
  0x11   :  { %640 = vmatpush3.bf16.msra.mxu0 %v639_v29  ;;  %v673_v4 = vpack.c.bf16 %v155_v1, %v154_v0  ;;  %v676_v8 = vpack.c.bf16 %v157_v7, %v156_v6  ;;  %v158_v9 = vld [vmem:[%s1075_s3 + $0x70] sm:$0xff]  ;;  %v159_v10 = vld [vmem:[%s1075_s3 + $0x78] sm:$0xff]  ;;  %v238_v13 = vld [vmem:[%s1076_s5] sm:$0xff] }
  0x12   :  { %642 = vmatprep.subr.bf16.mxu0 %v641_v33  ;;  %v679_v11 = vpack.c.bf16 %v159_v10, %v158_v9  ;;  %v239_v14 = vld [vmem:[%s1076_s5 + $0x8] sm:$0xff]  ;;  %v240_v15 = vld [vmem:[%s1076_s5 + $0x10] sm:$0xff]  ;;  %v241_v17 = vld [vmem:[%s1076_s5 + $0x18] sm:$0xff] }
  0x13   :  { %665 = vmatpush3.bf16.msra.mxu1 %v664_v47  ;;  %v682_v16 = vpack.c.bf16 %v239_v14, %v238_v13  ;;  %v685_v18 = vpack.c.bf16 %v241_v17, %v240_v15  ;;  %v242_v19 = vld [vmem:[%s1076_s5 + $0x20] sm:$0xff]  ;;  %v243_v20 = vld [vmem:[%s1076_s5 + $0x28] sm:$0xff]  ;;  %v244_v22 = vld [vmem:[%s1076_s5 + $0x30] sm:$0xff] }
  0x14   :  { %666 = vmatprep.subr.bf16.mxu1 %v732_v3  ;;  %v688_v21 = vpack.c.bf16 %v243_v20, %v242_v19  ;;  %v245_v23 = vld [vmem:[%s1076_s5 + $0x38] sm:$0xff]  ;;  %v246_v25 = vld [vmem:[%s1076_s5 + $0x40] sm:$0xff]  ;;  %v247_v26 = vld [vmem:[%s1076_s5 + $0x48] sm:$0xff] }
  0x15   :  { %644 = vmatpush3.bf16.msra.mxu0 %v643_v41  ;;  %v691_v24 = vpack.c.bf16 %v245_v23, %v244_v22  ;;  %v694_v27 = vpack.c.bf16 %v247_v26, %v246_v25  ;;  %v248_v28 = vld [vmem:[%s1076_s5 + $0x50] sm:$0xff]  ;;  %v249_v29 = vld [vmem:[%s1076_s5 + $0x58] sm:$0xff]  ;;  %v250_v31 = vld [vmem:[%s1076_s5 + $0x60] sm:$0xff] }
  0x16   :  { %646 = vmatprep.subr.bf16.mxu0 %v645_v42  ;;  %v697_v30 = vpack.c.bf16 %v249_v29, %v248_v28  ;;  %v251_v32 = vld [vmem:[%s1076_s5 + $0x68] sm:$0xff]  ;;  %v430_v35 = vld [vmem:[%s1077_s2] ss:$0 sm:$0xff]  ;;  %v252_v40 = vld [vmem:[%s1076_s5 + $0x70] sm:$0xff] }
  0x17   :  { %668 = vmatpush3.bf16.msra.mxu1 %v667_v56  ;;  %v700_v33 = vpack.c.bf16 %v251_v32, %v250_v31  ;;  %v253_v41 = vld [vmem:[%s1076_s5 + $0x78] sm:$0xff]  ;;  %v332_v43 = vld [vmem:[%s1078_s7] sm:$0xff]  ;;  %v333_v44 = vld [vmem:[%s1078_s7 + $0x8] sm:$0xff] }
  0x18   :  { %669 = vmatprep.subr.bf16.mxu1 %v732_v3  ;;  %v703_v42 = vpack.c.bf16 %v253_v41, %v252_v40  ;;  %v334_v45 = vld [vmem:[%s1078_s7 + $0x10] sm:$0xff]  ;;  %v706_v46 = vpack.c.bf16 %v333_v44, %v332_v43  ;;  %v335_v47 = vld [vmem:[%s1078_s7 + $0x18] sm:$0xff]  ;;  %v336_v49 = vld [vmem:[%s1078_s7 + $0x20] sm:$0xff] }
  0x19   :  { %648 = vmatpush3.bf16.msra.mxu0 %v647_v50  ;;  %v709_v48 = vpack.c.bf16 %v335_v47, %v334_v45  ;;  %v337_v50 = vld [vmem:[%s1078_s7 + $0x28] sm:$0xff]  ;;  %v338_v52 = vld [vmem:[%s1078_s7 + $0x30] sm:$0xff]  ;;  %v339_v53 = vld [vmem:[%s1078_s7 + $0x38] sm:$0xff] }
  0x1a   :  { %650 = vmatprep.subr.bf16.mxu0 %v649_v51  ;;  %v712_v51 = vpack.c.bf16 %v337_v50, %v336_v49  ;;  %v715_v54 = vpack.c.bf16 %v339_v53, %v338_v52  ;;  %v340_v55 = vld [vmem:[%s1078_s7 + $0x40] sm:$0xff]  ;;  %v341_v56 = vld [vmem:[%s1078_s7 + $0x48] sm:$0xff]  ;;  %v342_v58 = vld [vmem:[%s1078_s7 + $0x50] sm:$0xff] }
  0x1b   :  { %671 = vmatpush3.bf16.msra.mxu1 %v670_v63  ;;  %v718_v57 = vpack.c.bf16 %v341_v56, %v340_v55  ;;  %v344_v61 = vld [vmem:[%s1078_s7 + $0x60] sm:$0xff]  ;;  %v345_v62 = vld [vmem:[%s1078_s7 + $0x68] sm:$0xff]  ;;  %v346_v6 = vld [vmem:[%s1078_s7 + $0x70] sm:$0xff] }
  0x1c   :  { %672 = vmatprep.subr.bf16.mxu1 %v732_v3  ;;  %v724_v63 = vpack.c.bf16 %v345_v62, %v344_v61  ;;  %v431_v0 = vld [vmem:[%s1079_s4] ss:$0 sm:$0xff]  ;;  %v347_v7 = vld [vmem:[%s1078_s7 + $0x78] sm:$0xff] }
  0x1d   :  { %652 = vmatpush3.bf16.msra.mxu0 %v651_v59  ;;  %v343_v59 = vld [vmem:[%s1078_s7 + $0x58] sm:$0xff]  ;;  %v433_v13 = vld [vmem:[%s1081_s8] ss:$0 sm:$0xff] }
  0x1e   :  { %654 = vmatprep.subr.bf16.mxu0 %v653_v60  ;;  %v721_v60 = vpack.c.bf16 %v343_v59, %v342_v58 }
  0x1f   :  { %674 = vmatpush3.bf16.msra.mxu1 %v673_v4 }
  0x20   :  { %675 = vmatprep.subr.bf16.mxu1 %v732_v3 }
  0x21   :  { %656 = vmatpush3.bf16.msra.mxu0 %v655_v2 }
  0x22   :  { %681 = vmatprep.subr.bf16.mxu0 %v732_v3 }
  0x23   :  { %677 = vmatpush3.bf16.msra.mxu1 %v676_v8  ;;  %v727_v8 = vpack.c.bf16 %v347_v7, %v346_v6 }
  0x24   :  { %138 = vmatmul.mubr.f32.vlgmr.msra.gmra.mrb[0].mxu0 %v32_v5  ;;  %678 = vmatprep.subr.bf16.mxu1 %v732_v3 }
  0x25   :  { %587 = vmatprep.mubr.msk.f32.mxu0 %vm733_vm0, %v734_v12  ;;  %683 = vmatpush3.bf16.msra.mxu0 %v682_v16 }
  0x26   :  { %684 = vmatprep.subr.bf16.mxu0 %v732_v3 }
  0x27   :  { %680 = vmatpush3.bf16.msra.mxu1 %v679_v11 }
  0x28   :  { %705 = vmatprep.subr.bf16.mxu1 %v732_v3 }
  0x29   :  { %686 = vmatpush3.bf16.msra.mxu0 %v685_v18 }
  0x2a   :  { %687 = vmatprep.subr.bf16.mxu0 %v732_v3 }
  0x2d   :  { %689 = vmatpush3.bf16.msra.mxu0 %v688_v21 }
  0x2e   :  { %690 = vmatprep.subr.bf16.mxu0 %v732_v3 }
  0x31   :  { %692 = vmatpush3.bf16.msra.mxu0 %v691_v24 }
  0x32   :  { %693 = vmatprep.subr.bf16.mxu0 %v732_v3 }
  0x35   :  { %695 = vmatpush3.bf16.msra.mxu0 %v694_v27 }
  0x36   :  { %696 = vmatprep.subr.bf16.mxu0 %v732_v3 }
  0x39   :  { %698 = vmatpush3.bf16.msra.mxu0 %v697_v30 }
  0x3a   :  { %699 = vmatprep.subr.bf16.mxu0 %v732_v3 }
  0x3d   :  { %701 = vmatpush3.bf16.msra.mxu0 %v700_v33 }
  0x3e   :  { %702 = vmatprep.subr.bf16.mxu0 %v732_v3 }
  0x41   :  { %704 = vmatpush3.bf16.msra.mxu0 %v703_v42 }
  0xf7   :  { %v466_v34 = vpop.f32.mrb[0].mxu0 }
  0xf8   :  { %v467_v36 = vpop.f32.mrb[1].mxu0 }
  0xf9   :  { %v468_v37 = vadd.f32 %v467_v36, %v466_v34 }
  0xfb   :  { %v140_v38 = vadd.f32 %v468_v37, %v430_v35 }
  0xfd   :  { %v143_v39 = vmax.f32 %v140_v38, 0.0 }
  0xff   :  { %553 = vmatmul.mubr.f32.vlgmr.msra.gmra.mrb[0].mxu1 %v143_v39 }
 0x100   :  { %622 = vmatprep.mubr.msk.f32.mxu1 %vm733_vm0, %v734_v12  ;;  %707 = vmatpush3.bf16.msra.mxu1 %v706_v46 }
 0x101   :  { %708 = vmatprep.subr.bf16.mxu1 %v732_v3 }
 0x104   :  { %710 = vmatpush3.bf16.msra.mxu1 %v709_v48 }
 0x105   :  { %711 = vmatprep.subr.bf16.mxu1 %v732_v3 }
 0x108   :  { %713 = vmatpush3.bf16.msra.mxu1 %v712_v51 }
 0x109   :  { %714 = vmatprep.subr.bf16.mxu1 %v732_v3 }
 0x10c   :  { %716 = vmatpush3.bf16.msra.mxu1 %v715_v54 }
 0x10d   :  { %717 = vmatprep.subr.bf16.mxu1 %v732_v3 }
 0x110   :  { %719 = vmatpush3.bf16.msra.mxu1 %v718_v57 }
 0x111   :  { %720 = vmatprep.subr.bf16.mxu1 %v732_v3 }
 0x114   :  { %722 = vmatpush3.bf16.msra.mxu1 %v721_v60 }
 0x115   :  { %723 = vmatprep.subr.bf16.mxu1 %v732_v3 }
 0x118   :  { %725 = vmatpush3.bf16.msra.mxu1 %v724_v63 }
 0x119   :  { %726 = vmatprep.subr.bf16.mxu1 %v732_v3  ;;  %v432_v3 = vld [vmem:[%s1080_s6] ss:$0 sm:$0xff] }
 0x11c   :  { %728 = vmatpush3.bf16.msra.mxu1 %v727_v8 }
 0x1d2   :  { %v233_v1 = vpop.f32.mrb[0].mxu1 }
 0x1d3   :  { %v234_v2 = vadd.f32 %v431_v0, %v233_v1  ;;  %v554_v4 = vpop.f32.mrb[1].mxu1 }
 0x1d5   :  { %v237_v5 = vmax.f32 %v234_v2, 0.0 }
 0x1d7   :  { %588 = vmatmul.mubr.f32.vlgmr.msra.gmra.mrb[2].mxu0 %v237_v5 }
 0x2aa   :  { %v327_v9 = vpop.f32.mrb[2].mxu0 }
 0x2ab   :  { %v328_v10 = vadd.f32 %v432_v3, %v327_v9  ;;  %v589_v11 = vpop.f32.mrb[3].mxu0 }
 0x2ad   :  { %v331_v12 = vmax.f32 %v328_v10, 0.0 }
 0x2af   :  { %623 = vmatmul.mubr.f32.vlgmr.msra.gmra.mrb[2].mxu1 %v331_v12 }
 0x382   :  { %v421_v14 = vpop.f32.mrb[2].mxu1 }
 0x383   :  { %v422_v15 = vadd.f32 %v433_v13, %v421_v14  ;;  %v624_v16 = vpop.f32.mrb[3].mxu1 }
 0x385   :  { %425 = vst [vmem:[%s1082_s9] sm:$0xff] %v422_v15 }

</bundles_post_ra>
